<compile_context>
chip_gen: v5e
topology: v5e:2x2
jax: 0.10.0
libtpu: 0.0.40
codegen_flags: <defaults>
</compile_context>

<pallas_src>
import functools

import jax
import jax.numpy as jnp
from jax import lax
from jax.experimental import pallas as pl
from jax.experimental.pallas import tpu as pltpu

HIDDEN = 64  # fc1 / fc2 widths fixed by the module definition.


def _round_up(x, m):
    return ((x + m - 1) // m) * m


def _default_bf16_epilogue():
    """bf16 bias-add/ReLU only on chips with a bf16 VPU (v6e/v7x); f32 on v5e and older."""
    try:
        kind = jax.devices()[0].device_kind.lower()
    except Exception:
        return False
    return not any(t in kind for t in ("v2", "v3", "v4", "v5"))


def qnetwork_kernel(x_ref, w1_ref, b1_ref, w2_ref, b2_ref, w3_ref, b3_ref,
                    oT_ref, *, bf16_epilogue):
    """One batch tile.

    x arrives as (tb, S) f32 in its natural layout; the bf16 cast and the
    transpose into (features, batch) happen here (dot_general contracting dim 1
    of both operands), so the wrapper adds no extra HBM traffic. Activations
    stay (features, batch) so the batch dim sits on the 128-lane axis and every
    store is lane-dense. Weights are PyTorch (out, in) layout -> h = W @ x^T.
    """
    x = x_ref[...].astype(jnp.bfloat16)                               # (tb, S)

    # h1 = W1 @ x^T : contract dim 1 of both -> (64, tb), f32 MXU accumulation.
    h1 = lax.dot_general(w1_ref[...], x, (((1,), (1,)), ((), ())),
                         preferred_element_type=jnp.float32)
    if bf16_epilogue:    # v6e / v7x: bf16 VALU -> cheaper bias-add + ReLU
        h1 = jnp.maximum(h1.astype(jnp.bfloat16) + b1_ref[...], 0.0)
    else:                # v5e: no bf16 VPU, keep the epilogue in f32
        h1 = jnp.maximum(h1 + b1_ref[...], 0.0).astype(jnp.bfloat16)

    h2 = jnp.dot(w2_ref[...], h1, preferred_element_type=jnp.float32)  # (64, tb)
    if bf16_epilogue:
        h2 = jnp.maximum(h2.astype(jnp.bfloat16) + b2_ref[...], 0.0)
    else:
        h2 = jnp.maximum(h2 + b2_ref[...], 0.0).astype(jnp.bfloat16)

    out = jnp.dot(w3_ref[...], h2, preferred_element_type=jnp.float32) + b3_ref[...]
    oT_ref[...] = out.astype(oT_ref.dtype)                             # (8, tb)


@functools.partial(jax.jit, static_argnames=("tb", "bf16_epilogue"))
def qnetwork_forward(x, w1, b1, w2, b2, w3, b3, *, tb=1024, bf16_epilogue=None):
    """x: (B, S) float. Weights in PyTorch (out, in) layout, biases (out,).

    Returns (B, action_size) float32 Q-values.
    """
    if bf16_epilogue is None:
        bf16_epilogue = _default_bf16_epilogue()

    B, S = x.shape
    A = w3.shape[0]
    A_pad = _round_up(A, 8)          # full 8-sublane output tile -> unmasked stores

    # Tile selection: multiple of 128 (lane-dense output), capped at 4096 for
    # v5e's scoped-VMEM default, and small enough that a v7x megacore gets at
    # least ~4 balanced grid steps when the batch permits.
    tb = max(128, min(min(tb, 4096), _round_up(pl.cdiv(B, 4), 128)))
    n_steps = pl.cdiv(B, tb)         # ragged last tile handled by Pallas masking

    epi_dtype = jnp.bfloat16 if bf16_epilogue else jnp.float32

    # bf16 weights for the MXU; biases as columns in the epilogue dtype.
    w1b = w1.astype(jnp.bfloat16)
    w2b = w2.astype(jnp.bfloat16)
    w3b = jnp.zeros((A_pad, HIDDEN), jnp.bfloat16).at[:A].set(w3.astype(jnp.bfloat16))
    b1c = b1.astype(epi_dtype).reshape(HIDDEN, 1)
    b2c = b2.astype(epi_dtype).reshape(HIDDEN, 1)
    b3c = jnp.zeros((A_pad, 1), jnp.float32).at[:A, 0].set(b3.astype(jnp.float32))

    # Weights/biases: same block every step -> DMA'd once, resident in VMEM.
    resident = lambda shape: pl.BlockSpec(shape, lambda i: (0, 0))

    flops = 2 * B * (S * HIDDEN + HIDDEN * HIDDEN + HIDDEN * A_pad)
    bytes_accessed = (
        B * S * 4                                            # streamed f32 x (read once)
        + A_pad * B * 4                                      # f32 output
        + (w1b.size + w2b.size + w3b.size) * 2               # bf16 weights (once)
        + (b1c.size + b2c.size + b3c.size) * 4               # biases (once, upper bound)
    )

    oT = pl.pallas_call(
        functools.partial(qnetwork_kernel, bf16_epilogue=bf16_epilogue),
        out_shape=jax.ShapeDtypeStruct((A_pad, B), jnp.float32),
        grid=(n_steps,),
        in_specs=[
            pl.BlockSpec((tb, S), lambda i: (i, 0)),         # x streams in natural layout
            resident((HIDDEN, S)),
            resident((HIDDEN, 1)),
            resident((HIDDEN, HIDDEN)),
            resident((HIDDEN, 1)),
            resident((A_pad, HIDDEN)),
            resident((A_pad, 1)),
        ],
        out_specs=pl.BlockSpec((A_pad, tb), lambda i: (0, i)),  # lane-dense (8, tb) tile
        compiler_params=pltpu.CompilerParams(
            dimension_semantics=("parallel",)),              # v7x: 2 TCs share batch steps
        cost_estimate=pl.CostEstimate(
            flops=flops, transcendentals=0, bytes_accessed=bytes_accessed),
    )(x.astype(jnp.float32), w1b, b1c, w2b, b2c, w3b, b3c)

    # Drop padded action rows, back to (B, A).
    return oT[:A, :].T


def qnetwork_reference(x, w1, b1, w2, b2, w3, b3, bf16_epilogue):
    """Pure-JAX reference with the same bf16-input / f32-accumulate math."""
    def layer(h, w, b, relu):
        acc = jnp.dot(h.astype(jnp.bfloat16), w.astype(jnp.bfloat16).T,
                      preferred_element_type=jnp.float32)
        if not relu:
            return acc + b
        if bf16_epilogue:
            return jnp.maximum(acc.astype(jnp.bfloat16) + b.astype(jnp.bfloat16), 0.0)
        return jnp.maximum(acc + b, 0.0).astype(jnp.bfloat16)

    h = layer(x, w1, b1, True)
    h = layer(h, w2, b2, True)
    return layer(h, w3, b3, False)


def init_linear_params(key, fan_in, fan_out):
    """PyTorch nn.Linear default init: U(-1/sqrt(fan_in), 1/sqrt(fan_in)).
    Weight in PyTorch (fan_out, fan_in) layout; bias (fan_out,)."""
    kw, kb = jax.random.split(key)
    bound = 1.0 / jnp.sqrt(jnp.float32(fan_in))
    w = jax.random.uniform(kw, (fan_out, fan_in), jnp.float32, -bound, bound)
    b = jax.random.uniform(kb, (fan_out,), jnp.float32, -bound, bound)
    return w, b


if __name__ == "__main__":
    state_size = 16
    action_size = 4

    key = jax.random.PRNGKey(0)
    kx, kx2, k1, k2, k3 = jax.random.split(key, 5)

    w1, b1 = init_linear_params(k1, state_size, HIDDEN)
    w2, b2 = init_linear_params(k2, HIDDEN, HIDDEN)
    w3, b3 = init_linear_params(k3, HIDDEN, action_size)

    epi = _default_bf16_epilogue()

    # Small batch: 2-step grid with a ragged last tile.
    x = jax.random.normal(kx, (200, state_size), jnp.float32)
    out = jax.block_until_ready(qnetwork_forward(x, w1, b1, w2, b2, w3, b3,
                                                 bf16_epilogue=epi))
    assert out.shape == (200, action_size)
    ref = qnetwork_reference(x, w1, b1, w2, b2, w3, b3, epi)
    assert jnp.allclose(out, ref, atol=2e-2, rtol=2e-2), \
        float(jnp.max(jnp.abs(out - ref)))

    # Larger batch: exercises the big (1024-wide) tile + ragged last step.
    x2 = jax.random.normal(kx2, (4500, state_size), jnp.float32)
    out2 = jax.block_until_ready(qnetwork_forward(x2, w1, b1, w2, b2, w3, b3,
                                                  bf16_epilogue=epi))
    assert out2.shape == (4500, action_size)
    ref2 = qnetwork_reference(x2, w1, b1, w2, b2, w3, b3, epi)
    assert jnp.allclose(out2, ref2, atol=2e-2, rtol=2e-2), \
        float(jnp.max(jnp.abs(out2 - ref2)))

    print("KERNEL_OK")
</pallas_src>

<mosaic_0001>
module attributes {stable_mosaic.version = 11 : i64} {
  func.func @qnetwork_kernel(%arg0: i32, %arg1: memref<128x16xf32, #tpu.memory_space<vmem>>, %arg2: memref<64x16xbf16, #tpu.memory_space<vmem>>, %arg3: memref<64x1xbf16, #tpu.memory_space<vmem>>, %arg4: memref<64x64xbf16, #tpu.memory_space<vmem>>, %arg5: memref<64x1xbf16, #tpu.memory_space<vmem>>, %arg6: memref<8x64xbf16, #tpu.memory_space<vmem>>, %arg7: memref<8x1xf32, #tpu.memory_space<vmem>>, %arg8: memref<8x128xf32, #tpu.memory_space<vmem>>) attributes {dimension_semantics = [#tpu.dimension_semantics<parallel>], iteration_bounds = array<i64: 2>, scalar_prefetch = 0 : i64, scratch_operands = 0 : i64, tpu.core_type = #tpu.core_type<tc>, window_params = [{transform_indices = @transform_0, window_bounds = array<i64: 128, 16>}, {pipeline_mode = #tpu.pipeline_mode<synchronous>, transform_indices = @transform_1, window_bounds = array<i64: 64, 16>}, {pipeline_mode = #tpu.pipeline_mode<synchronous>, transform_indices = @transform_2, window_bounds = array<i64: 64, 1>}, {pipeline_mode = #tpu.pipeline_mode<synchronous>, transform_indices = @transform_3, window_bounds = array<i64: 64, 64>}, {pipeline_mode = #tpu.pipeline_mode<synchronous>, transform_indices = @transform_4, window_bounds = array<i64: 64, 1>}, {pipeline_mode = #tpu.pipeline_mode<synchronous>, transform_indices = @transform_5, window_bounds = array<i64: 8, 64>}, {pipeline_mode = #tpu.pipeline_mode<synchronous>, transform_indices = @transform_6, window_bounds = array<i64: 8, 1>}, {transform_indices = @transform_7, window_bounds = array<i64: 8, 128>}]} {
    %c0 = arith.constant 0 : index
    %c0_0 = arith.constant 0 : index
    %0 = vector.load %arg1[%c0, %c0_0] : memref<128x16xf32, #tpu.memory_space<vmem>>, vector<128x16xf32>
    %1 = arith.truncf %0 : vector<128x16xf32> to vector<128x16xbf16>
    %c0_1 = arith.constant 0 : index
    %c0_2 = arith.constant 0 : index
    %2 = vector.load %arg2[%c0_1, %c0_2] : memref<64x16xbf16, #tpu.memory_space<vmem>>, vector<64x16xbf16>
    %cst = arith.constant dense<0.000000e+00> : vector<64x128xf32>
    %3 = tpu.matmul %2, %1, %cst {dimension_numbers = #tpu.dot_dimension_numbers<[1], [1], [0], [0], [0, 0, 1, 0], [], []>} : vector<64x16xbf16>, vector<128x16xbf16>, vector<64x128xf32> -> vector<64x128xf32>
    %4 = arith.truncf %3 : vector<64x128xf32> to vector<64x128xbf16>
    %c0_3 = arith.constant 0 : index
    %c0_4 = arith.constant 0 : index
    %5 = vector.load %arg3[%c0_3, %c0_4] : memref<64x1xbf16, #tpu.memory_space<vmem>>, vector<64x1xbf16>
    %6 = vector.broadcast %5 : vector<64x1xbf16> to vector<64x128xbf16>
    %7 = arith.addf %4, %6 : vector<64x128xbf16>
    %cst_5 = arith.constant 0.000000e+00 : bf16
    %8 = vector.broadcast %cst_5 : bf16 to vector<64x128xbf16>
    %9 = arith.maximumf %7, %8 : vector<64x128xbf16>
    %c0_6 = arith.constant 0 : index
    %c0_7 = arith.constant 0 : index
    %10 = vector.load %arg4[%c0_6, %c0_7] : memref<64x64xbf16, #tpu.memory_space<vmem>>, vector<64x64xbf16>
    %cst_8 = arith.constant dense<0.000000e+00> : vector<64x128xf32>
    %11 = tpu.matmul %10, %9, %cst_8 {dimension_numbers = #tpu.dot_dimension_numbers<[1], [0], [0], [1], [0, 0, 1, 1], [], []>} : vector<64x64xbf16>, vector<64x128xbf16>, vector<64x128xf32> -> vector<64x128xf32>
    %12 = arith.truncf %11 : vector<64x128xf32> to vector<64x128xbf16>
    %c0_9 = arith.constant 0 : index
    %c0_10 = arith.constant 0 : index
    %13 = vector.load %arg5[%c0_9, %c0_10] : memref<64x1xbf16, #tpu.memory_space<vmem>>, vector<64x1xbf16>
    %14 = vector.broadcast %13 : vector<64x1xbf16> to vector<64x128xbf16>
    %15 = arith.addf %12, %14 : vector<64x128xbf16>
    %cst_11 = arith.constant 0.000000e+00 : bf16
    %16 = vector.broadcast %cst_11 : bf16 to vector<64x128xbf16>
    %17 = arith.maximumf %15, %16 : vector<64x128xbf16>
    %c0_12 = arith.constant 0 : index
    %c0_13 = arith.constant 0 : index
    %18 = vector.load %arg6[%c0_12, %c0_13] : memref<8x64xbf16, #tpu.memory_space<vmem>>, vector<8x64xbf16>
    %cst_14 = arith.constant dense<0.000000e+00> : vector<8x128xf32>
    %19 = tpu.matmul %18, %17, %cst_14 {dimension_numbers = #tpu.dot_dimension_numbers<[1], [0], [0], [1], [0, 0, 1, 1], [], []>} : vector<8x64xbf16>, vector<64x128xbf16>, vector<8x128xf32> -> vector<8x128xf32>
    %c0_15 = arith.constant 0 : index
    %c0_16 = arith.constant 0 : index
    %20 = vector.load %arg7[%c0_15, %c0_16] : memref<8x1xf32, #tpu.memory_space<vmem>>, vector<8x1xf32>
    %21 = vector.broadcast %20 : vector<8x1xf32> to vector<8x128xf32>
    %22 = arith.addf %19, %21 : vector<8x128xf32>
    %c0_17 = arith.constant 0 : index
    %c0_18 = arith.constant 0 : index
    %23 = vector.load %arg8[%c0_17, %c0_18] : memref<8x128xf32, #tpu.memory_space<vmem>>, vector<8x128xf32>
    tpu.vector_store %arg8[%c0_17, %c0_18], %22 {strides = array<i32>} : memref<8x128xf32, #tpu.memory_space<vmem>>, vector<8x128xf32>,
    return
  }
  func.func @transform_0(%arg0: i32) -> (i32, i32) {
    %c0_i32 = arith.constant 0 : i32
    %c0_i32_0 = arith.constant 0 : i32
    return %arg0, %c0_i32 : i32, i32
  }
  func.func @transform_1(%arg0: i32) -> (i32, i32) {
    %c0_i32 = arith.constant 0 : i32
    %c0_i32_0 = arith.constant 0 : i32
    %c0_i32_1 = arith.constant 0 : i32
    return %c0_i32, %c0_i32_0 : i32, i32
  }
  func.func @transform_2(%arg0: i32) -> (i32, i32) {
    %c0_i32 = arith.constant 0 : i32
    %c0_i32_0 = arith.constant 0 : i32
    %c0_i32_1 = arith.constant 0 : i32
    return %c0_i32, %c0_i32_0 : i32, i32
  }
  func.func @transform_3(%arg0: i32) -> (i32, i32) {
    %c0_i32 = arith.constant 0 : i32
    %c0_i32_0 = arith.constant 0 : i32
    %c0_i32_1 = arith.constant 0 : i32
    return %c0_i32, %c0_i32_0 : i32, i32
  }
  func.func @transform_4(%arg0: i32) -> (i32, i32) {
    %c0_i32 = arith.constant 0 : i32
    %c0_i32_0 = arith.constant 0 : i32
    %c0_i32_1 = arith.constant 0 : i32
    return %c0_i32, %c0_i32_0 : i32, i32
  }
  func.func @transform_5(%arg0: i32) -> (i32, i32) {
    %c0_i32 = arith.constant 0 : i32
    %c0_i32_0 = arith.constant 0 : i32
    %c0_i32_1 = arith.constant 0 : i32
    return %c0_i32, %c0_i32_0 : i32, i32
  }
  func.func @transform_6(%arg0: i32) -> (i32, i32) {
    %c0_i32 = arith.constant 0 : i32
    %c0_i32_0 = arith.constant 0 : i32
    %c0_i32_1 = arith.constant 0 : i32
    return %c0_i32, %c0_i32_0 : i32, i32
  }
  func.func @transform_7(%arg0: i32) -> (i32, i32) {
    %c0_i32 = arith.constant 0 : i32
    %c0_i32_0 = arith.constant 0 : i32
    return %c0_i32, %arg0 : i32, i32
  }
}

</mosaic_0001>

<bundles_post_ra>
// kernel: qnetwork_forward.1
= control target key start
LH: loop header
LB: loop body
LE: loop exit
PB: predicated region body
PF: predicated region fallthrough
CT: control target
= control target key end

     0   :  { %s983_s24 = smov 0   ;;  %s1136_s0 = inlined_call_operand.vmem [shape: f32[200,16], index: 0, kind: input, shape index: {}]   ;;  %s1137_s1 = inlined_call_operand.vmem [shape: bf16[64,16], index: 1, kind: input, shape index: {}]   ;;  %s1138_s2 = inlined_call_operand.vmem [shape: bf16[64,1], index: 2, kind: input, shape index: {}]   ;;  %s1139_s3 = inlined_call_operand.vmem [shape: bf16[64,64], index: 3, kind: input, shape index: {}]   ;;  %s1140_s4 = inlined_call_operand.vmem [shape: bf16[64,1], index: 4, kind: input, shape index: {}]   ;;  %s1141_s5 = inlined_call_operand.vmem [shape: bf16[8,64], index: 5, kind: input, shape index: {}]   ;;  %s1142_s6 = inlined_call_operand.vmem [shape: f32[8,1], index: 6, kind: input, shape index: {}]   ;;  %s1143_s7 = inlined_call_operand.vmem [shape: f32[8,200], index: 7, kind: output, shape index: {}]  }
   0x1 LB: > { %s989_s25 = sadd.s32 4294967295, %s939_s24   ;;  %p849_p0 = scmp.ge.s32.totalorder %s939_s24, 1  ;;  %s939_s24 = sphi %s983_s24, %s17_s24  }
   0x2   : > { %p246_p1 = scmp.lt.s32.totalorder %s939_s24, 3 }
   0x4   : > { %p247_p2 = pnand %p849_p0, %p246_p1 }
   0x5   : > { %s850_s26 = sshll.u32 (!%p247_p2), %s989_s25, 4  ;;  %p295_p4 = scmp.lt.s32.totalorder (!%p247_p2), %s989_s25, 1 }
   0x6   : > { %250 = sbr.rel (%p247_p2) target bundleno = 609 (0x261), region = 48  ;;  %p286_p3 = scmp.lt.s32.totalorder (!%p247_p2), %s850_s26, 24 }
   0xb   : > { %s1145_s26 = smov (!%p286_p3, %s850_s26), 24  ;;  %vm352_vm0 = vcmask 130048   ;;  %v432_v14 = vld [vmem:[%s1138_s2 + $0x18] sm:$0xf]  ;;  %v941_v16 = vmov 0   ;;  %v898_v45 = vld [vmem:[%s1137_s1 + $0x10] sm:$0xff] }
   0xc   : > { %s851_s27 = sshll.u32 %s1145_s26, 3  ;;  %930 = vset.pattern.permute.xlu0 %v941_v16  ;;  %931 = vset.pattern.permute.xlu1 %v941_v16  ;;  %v430_v20 = vld [vmem:[%s1138_s2 + $0x10] sm:$0xf]  ;;  %v433_v25 = vld [vmem:[%s1138_s2 + $0x1c] sm:$0xf]  ;;  %v896_v46 = vld [vmem:[%s1137_s1] sm:$0xff] }
   0xd   : > { %s997_s30 = scalar_lea.vmem %s1136_s0, %s851_s27  ;;  %490 = vperm.xlu0 %930, %v432_v14   ;;  %932 = vset.pattern.permute.xlu2 %v941_v16  ;;  %v431_v26 = vld [vmem:[%s1138_s2 + $0x14] sm:$0xf]  ;;  %v426_v31 = vld [vmem:[%s1138_s2] sm:$0xf]  ;;  %v427_v32 = vld [vmem:[%s1138_s2 + $0x4] sm:$0xf] }
   0xe   : > { %v314_v0 = vld [vmem:[%s997_s30 + $0x70] sm:$0xff]  ;;  %v315_v1 = vld [vmem:[%s997_s30 + $0x78] sm:$0xff]  ;;  %v312_v3 = vld [vmem:[%s997_s30 + $0x60] sm:$0xff]  ;;  %472 = vperm.xlu1 %931, %v430_v20   ;;  %v942_v60 = vmov 839922192   ;;  %vm586_vm1 = vcmask 523264  }
   0xf   : > { %v323_v2 = vpack.c.bf16 %v315_v1, %v314_v0  ;;  %v313_v4 = vld [vmem:[%s997_s30 + $0x68] sm:$0xff]  ;;  %v310_v8 = vld [vmem:[%s997_s30 + $0x50] sm:$0xff]  ;;  %v311_v9 = vld [vmem:[%s997_s30 + $0x58] sm:$0xff]  ;;  %v440_v61 = vunpack.c.l.s4 %v942_v60  ;;  %s1147_s25 = smov (!%p295_p4, %s989_s25), 1 }
  0x10   : > { %v322_v6 = vpack.c.bf16 %v313_v4, %v312_v3  ;;  %v321_v10 = vpack.c.bf16 %v311_v9, %v310_v8  ;;  %v308_v12 = vld [vmem:[%s997_s30 + $0x40] sm:$0xff]  ;;  %v309_v13 = vld [vmem:[%s997_s30 + $0x48] sm:$0xff]  ;;  %v306_v18 = vld [vmem:[%s997_s30 + $0x30] sm:$0xff]  ;;  %s852_s18 = sshll.u32 %s1147_s25, 3 }
  0x11   : > { %v387_v5 = vsel %vm352_vm0, %v323_v2, 0  ;;  %v320_v15 = vpack.c.bf16 %v309_v13, %v308_v12  ;;  %v307_v19 = vld [vmem:[%s997_s30 + $0x38] sm:$0xff]  ;;  %v304_v23 = vld [vmem:[%s997_s30 + $0x20] sm:$0xff]  ;;  %v305_v24 = vld [vmem:[%s997_s30 + $0x28] sm:$0xff]  ;;  %v1090_v0 = vunpack.c.0.s8 %v440_v61  ;;  %s298_s21 = scalar_lea.vmem %s1143_s7, %s852_s18 }
  0x12   : > { %905 = vmatpush.bf16.xpose.msra.mxu3 %v387_v5  ;;  %389 = vmatpush.bf16.xpose.msra.mxu0 %v387_v5  ;;  %v384_v7 = vsel %vm352_vm0, %v322_v6, 0  ;;  %v381_v11 = vsel %vm352_vm0, %v321_v10, 0  ;;  %v319_v21 = vpack.c.bf16 %v307_v19, %v306_v18  ;;  %v318_v27 = vpack.c.bf16 %v305_v24, %v304_v23  ;;  %v302_v29 = vld [vmem:[%s997_s30 + $0x10] sm:$0xff]  ;;  %v303_v30 = vld [vmem:[%s997_s30 + $0x18] sm:$0xff]  ;;  %v300_v35 = vld [vmem:[%s997_s30] sm:$0xff] }
  0x13   : > { %904 = vmatpush.bf16.xpose.msra.mxu2 %v387_v5  ;;  %v378_v17 = vsel %vm352_vm0, %v320_v15, 0  ;;  %v317_v33 = vpack.c.bf16 %v303_v30, %v302_v29  ;;  %v301_v36 = vld [vmem:[%s997_s30 + $0x8] sm:$0xff]  ;;  %v643_v37 = vld [vmem:[%s1140_s4 + $0x1c] sm:$0xf]  ;;  %v640_v38 = vld [vmem:[%s1140_s4 + $0x10] sm:$0xf] }
  0x14   : > { %v375_v22 = vsel %vm352_vm0, %v319_v21, 0  ;;  %v372_v28 = vsel %vm352_vm0, %v318_v27, 0  ;;  %v428_v39 = vld [vmem:[%s1138_s2 + $0x8] sm:$0xf]  ;;  %v316_v40 = vpack.c.bf16 %v301_v36, %v300_v35  ;;  %v639_v43 = vld [vmem:[%s1140_s4 + $0xc] sm:$0xf] }
  0x15   : > { %499 = vperm.xlu0 %930, %v433_v25   ;;  %v369_v34 = vsel %vm352_vm0, %v317_v33, 0  ;;  %454 = vperm.xlu2 %932, %v428_v39   ;;  %v638_v42 = vld [vmem:[%s1140_s4 + $0x8] sm:$0xf]  ;;  %v429_v44 = vld [vmem:[%s1138_s2 + $0xc] sm:$0xf]  ;;  %v769_v49 = vld [vmem:[%s1142_s6] sm:$0xff] }
  0x16   : > { %481 = vperm.xlu1 %931, %v431_v26   ;;  %v366_v41 = vsel %vm352_vm0, %v316_v40, 0  ;;  %v897_v47 = vld [vmem:[%s1137_s1 + $0x8] sm:$0xff]  ;;  %v637_v48 = vld [vmem:[%s1140_s4 + $0x4] sm:$0xf]  ;;  %v642_v50 = vld [vmem:[%s1140_s4 + $0x18] sm:$0xf] }
  0x17   : > { %v641_v51 = vld [vmem:[%s1140_s4 + $0x14] sm:$0xf]  ;;  %v899_v52 = vld [vmem:[%s1137_s1 + $0x18] sm:$0xff]  ;;  %v636_v53 = vld [vmem:[%s1140_s4] sm:$0xf] }
  0x18   : > { %v900_v61 = vld [vmem:[%s1139_s3] sm:$0xff] }
  0x1a   : > { %907 = vmatpush.bf16.xpose.msra.mxu3 %v384_v7  ;;  %390 = vmatpush.bf16.xpose.msra.mxu0 %v384_v7 }
  0x1b   : > { %906 = vmatpush.bf16.xpose.msra.mxu2 %v384_v7 }
  0x1d   : > { %436 = vperm.xlu0 %930, %v426_v31   ;;  %463 = vperm.xlu2 %932, %v429_v44  }
  0x1e   : > { %445 = vperm.xlu1 %931, %v427_v32  }
  0x22   : > { %909 = vmatpush.bf16.xpose.msra.mxu3 %v381_v11  ;;  %391 = vmatpush.bf16.xpose.msra.mxu0 %v381_v11 }
  0x23   : > { %908 = vmatpush.bf16.xpose.msra.mxu2 %v381_v11 }
  0x25   : > { %709 = vperm.xlu0 %930, %v643_v37   ;;  %700 = vperm.xlu2 %932, %v642_v50  }
  0x26   : > { %682 = vperm.xlu1 %931, %v640_v38  }
  0x2a   : > { %911 = vmatpush.bf16.xpose.msra.mxu3 %v378_v17  ;;  %392 = vmatpush.bf16.xpose.msra.mxu0 %v378_v17 }
  0x2b   : > { %910 = vmatpush.bf16.xpose.msra.mxu2 %v378_v17 }
  0x2d   : > { %664 = vperm.xlu0 %930, %v638_v42   ;;  %691 = vperm.xlu2 %932, %v641_v51  }
  0x2e   : > { %673 = vperm.xlu1 %931, %v639_v43  }
  0x32   : > { %913 = vmatpush.bf16.xpose.msra.mxu3 %v375_v22  ;;  %393 = vmatpush.bf16.xpose.msra.mxu0 %v375_v22 }
  0x33   : > { %912 = vmatpush.bf16.xpose.msra.mxu2 %v375_v22 }
  0x35   : > { %655 = vperm.xlu0 %930, %v637_v48   ;;  %646 = vperm.xlu2 %932, %v636_v53  }
  0x36   : > { %772 = vperm.xlu1 %931, %v769_v49  }
  0x3a   : > { %915 = vmatpush.bf16.xpose.msra.mxu3 %v372_v28  ;;  %394 = vmatpush.bf16.xpose.msra.mxu0 %v372_v28 }
  0x3b   : > { %914 = vmatpush.bf16.xpose.msra.mxu2 %v372_v28 }
  0x42   : > { %917 = vmatpush.bf16.xpose.msra.mxu3 %v369_v34  ;;  %395 = vmatpush.bf16.xpose.msra.mxu0 %v369_v34 }
  0x43   : > { %916 = vmatpush.bf16.xpose.msra.mxu2 %v369_v34 }
  0x4a   : > { %919 = vmatpush.bf16.xpose.msra.mxu3 %v366_v41  ;;  %396 = vmatpush.bf16.xpose.msra.mxu0 %v366_v41 }
  0x4b   : > { %918 = vmatpush.bf16.xpose.msra.mxu2 %v366_v41 }
  0x51   : > { %871 = vmatmul.msk.bf16.vlgmr.msra.gmra.mxu3 %vm352_vm0, %v898_v45  ;;  %869 = vmatmul.msk.bf16.vlgmr.msra.gmra.mxu0 %vm352_vm0, %v896_v46 }
  0x52   : > { %870 = vmatmul.msk.bf16.vlgmr.msra.gmra.mxu2 %vm352_vm0, %v897_v47 }
  0x61   : > { %872 = vmatmul.msk.bf16.gmra.mxu3 %vm352_vm0, %v899_v52 }
  0x6f   : > { %v455_v58 = vpop.permute.xlu2 %454 }
  0x70   : > { %v460_v9 = vperm.slane %v455_v58, %v1090_v0 }
  0x72   : > { %v516_v25 = vunpack.c.l.bf16 %v460_v9 }
  0x77   : > { %v464_v10 = vpop.permute.xlu2 %463 }
  0x78   : > { %v469_v13 = vperm.slane %v464_v10, %v1090_v0 }
  0x7a   : > { %v517_v28 = vunpack.c.l.bf16 %v469_v13 }
  0x7f   : > { %v491_v55 = vpop.permute.xlu0 %490 }
  0x80   : > { %v473_v56 = vpop.permute.xlu1 %472  ;;  %v496_v3 = vperm.slane %v491_v55, %v1090_v0 }
  0x81   : > { %v478_v7 = vperm.slane %v473_v56, %v1090_v0 }
  0x82   : > { %v520_v12 = vunpack.c.l.bf16 %v496_v3 }
  0x83   : > { %v518_v23 = vunpack.c.l.bf16 %v478_v7 }
  0x87   : > { %v500_v1 = vpop.permute.xlu0 %499 }
  0x88   : > { %v482_v2 = vpop.permute.xlu1 %481  ;;  %v505_v8 = vperm.slane %v500_v1, %v1090_v0  ;;  %v903_v1 = vld [vmem:[%s1139_s3 + $0x18] sm:$0xff] }
  0x89   : > { %v487_v5 = vperm.slane %v482_v2, %v1090_v0  ;;  %v701_v2 = vpop.permute.xlu2 %700 }
  0x8a   : > { %v521_v24 = vunpack.c.l.bf16 %v505_v8 }
  0x8b   : > { %v519_v16 = vunpack.c.l.bf16 %v487_v5 }
  0x8f   : > { %v437_v26 = vpop.permute.xlu0 %436 }
  0x90   : > { %v446_v27 = vpop.permute.xlu1 %445  ;;  %v442_v32 = vperm.slane %v437_v26, %v1090_v0 }
  0x91   : > { %v451_v33 = vperm.slane %v446_v27, %v1090_v0 }
  0x92   : > { %v514_v43 = vunpack.c.l.bf16 %v442_v32 }
  0x93   : > { %v515_v44 = vunpack.c.l.bf16 %v451_v33 }
  0x97   : > { %v710_v3 = vpop.permute.xlu0 %709 }
  0x98   : > { %v683_v27 = vpop.permute.xlu1 %682  ;;  %v715_v32 = vperm.slane %v710_v3, %v1090_v0 }
  0x9f   : > { %v665_v5 = vpop.permute.xlu0 %664 }
  0xce   : > { %v398_v62 = vpop.f32.mrf.mxu0 }
  0xcf   : > { %v418_v34 = vpack.c.bf16 %v398_v62, %v398_v62  ;;  %v901_v62 = vld [vmem:[%s1139_s3 + $0x8] sm:$0xff] }
  0xd1   : > { %v506_v45 = vunpack.c.l.bf16 %v418_v34 }
  0xd3   : > { %v522_v52 = vadd.f32 %v514_v43, %v506_v45  ;;  %v731_v43 = vunpack.c.l.bf16 %v715_v32 }
  0xd4   : > { %v408_v54 = vpop.f32.mrf.mxu3 }
  0xd5   : > { %v403_v59 = vpop.f32.mrf.mxu2  ;;  %v422_v14 = vpack.c.bf16 %v408_v54, %v408_v54 }
  0xd6   : > { %v400_v19 = vpop.f32.mrf.mxu0  ;;  %v420_v20 = vpack.c.bf16 %v403_v59, %v403_v59  ;;  %v546_v59 = vmax.f32 %v522_v52, 0.0 }
  0xd7   : > { %v510_v29 = vunpack.c.l.bf16 %v422_v14  ;;  %v419_v35 = vpack.c.bf16 %v400_v19, %v400_v19 }
  0xd8   : > { %v508_v37 = vunpack.c.l.bf16 %v420_v20 }
  0xd9   : > { %v526_v40 = vadd.f32 %v518_v23, %v510_v29  ;;  %v507_v46 = vunpack.c.l.bf16 %v419_v35 }
  0xda   : > { %v524_v47 = vadd.f32 %v516_v25, %v508_v37 }
  0xdb   : > { %v550_v51 = vmax.f32 %v526_v40, 0.0  ;;  %v523_v53 = vadd.f32 %v515_v44, %v507_v46 }
  0xdc   : > { %v410_v57 = vpop.f32.mrf.mxu3  ;;  %v548_v55 = vmax.f32 %v524_v47, 0.0 }
  0xdd   : > { %v423_v6 = vpack.c.bf16 %v410_v57, %v410_v57  ;;  %v405_v11 = vpop.f32.mrf.mxu2  ;;  %v547_v57 = vmax.f32 %v523_v53, 0.0 }
  0xde   : > { %v421_v21 = vpack.c.bf16 %v405_v11, %v405_v11 }
  0xdf   : > { %v511_v18 = vunpack.c.l.bf16 %v423_v6  ;;  %v554_v60 = vpack.c.bf16 %v547_v57, %v546_v59 }
  0xe0   : > { %v509_v38 = vunpack.c.l.bf16 %v421_v21 }
  0xe1   : > { %v527_v36 = vadd.f32 %v519_v16, %v511_v18 }
  0xe2   : > { %v525_v48 = vadd.f32 %v517_v28, %v509_v38 }
  0xe3   : > { %v551_v50 = vmax.f32 %v527_v36, 0.0  ;;  %v688_v36 = vperm.slane %v683_v27, %v1090_v0 }
  0xe4   : > { %v413_v63 = vpop.f32.mrf.mxu3  ;;  %v549_v56 = vmax.f32 %v525_v48, 0.0 }
  0xe5   : > { %v424_v4 = vpack.c.bf16 %v413_v63, %v413_v63  ;;  %v556_v54 = vpack.c.bf16 %v551_v50, %v550_v51  ;;  %v902_v63 = vld [vmem:[%s1139_s3 + $0x10] sm:$0xff]  ;;  %v728_v50 = vunpack.c.l.bf16 %v688_v36  ;;  %v670_v51 = vperm.slane %v665_v5, %v1090_v0 }
  0xe6   : > { %v555_v58 = vpack.c.bf16 %v549_v56, %v548_v55 }
  0xe7   : > { %v512_v15 = vunpack.c.l.bf16 %v424_v4  ;;  %v692_v4 = vpop.permute.xlu2 %691 }
  0xe8   : > { %v697_v33 = vperm.slane %v692_v4, %v1090_v0 }
  0xe9   : > { %v528_v31 = vadd.f32 %v520_v12, %v512_v15  ;;  %v656_v12 = vpop.permute.xlu0 %655 }
  0xea   : > { %v661_v14 = vperm.slane %v656_v12, %v1090_v0  ;;  %v729_v45 = vunpack.c.l.bf16 %v697_v33 }
  0xeb   : > { %v552_v41 = vmax.f32 %v528_v31, 0.0 }
  0xec   : > { %v415_v17 = vpop.f32.mrf.mxu3 }
  0xed   : > { %v425_v22 = vpack.c.bf16 %v415_v17, %v415_v17  ;;  %v725_v17 = vunpack.c.l.bf16 %v661_v14 }
  0xef   : > { %v513_v30 = vunpack.c.l.bf16 %v425_v22  ;;  %v647_v6 = vpop.permute.xlu2 %646 }
  0xf0   : > { %v652_v7 = vperm.slane %v647_v6, %v1090_v0  ;;  %v768_v6 = vld [vmem:[%s1141_s5] sm:$0xf] }
  0xf1   : > { %v529_v39 = vadd.f32 %v521_v24, %v513_v30  ;;  %v706_v30 = vperm.slane %v701_v2, %v1090_v0 }
  0xf2   : > { %v724_v10 = vunpack.c.l.bf16 %v652_v7 }
  0xf3   : > { %v553_v42 = vmax.f32 %v529_v39, 0.0  ;;  %v730_v38 = vunpack.c.l.bf16 %v706_v30  ;;  %v674_v39 = vpop.permute.xlu1 %673 }
  0xf4   : > { %v679_v44 = vperm.slane %v674_v39, %v1090_v0 }
  0xf5   : > { %v557_v49 = vpack.c.bf16 %v553_v42, %v552_v41 }
  0xf6   : > { %v727_v55 = vunpack.c.l.bf16 %v679_v44 }
  0xf7   : > { %603 = vmatpush.bf16.msra.mxu1 %v557_v49 }
  0xfb   : > { %604 = vmatpush.bf16.msra.mxu1 %v556_v54  ;;  %v773_v7 = vpop.permute.xlu1 %772 }
  0xff   : > { %605 = vmatpush.bf16.msra.mxu1 %v555_v58 }
 0x103   : > { %606 = vmatpush.bf16.msra.mxu1 %v554_v60  ;;  %v726_v60 = vunpack.c.l.bf16 %v670_v51 }
 0x106   : > { %889 = vmatmul.msk.bf16.vlgmr.msra.gmra.mxu1 %vm586_vm1, %v900_v61 }
 0x116   : > { %890 = vmatmul.msk.bf16.gmra.mxu1 %vm586_vm1, %v901_v62 }
 0x126   : > { %891 = vmatmul.msk.bf16.gmra.mxu1 %vm586_vm1, %v902_v63 }
 0x136   : > { %892 = vmatmul.msk.bf16.gmra.mxu1 %vm586_vm1, %v903_v1 }
 0x183   : > { %v608_v8 = vpop.f32.mrf.mxu1 }
 0x184   : > { %v628_v9 = vpack.c.bf16 %v608_v8, %v608_v8 }
 0x186   : > { %v716_v11 = vunpack.c.l.bf16 %v628_v9 }
 0x188   : > { %v732_v13 = vadd.f32 %v724_v10, %v716_v11 }
 0x18a   : > { %v756_v20 = vmax.f32 %v732_v13, 0.0 }
 0x18b   : > { %v610_v15 = vpop.f32.mrf.mxu1 }
 0x18c   : > { %v629_v16 = vpack.c.bf16 %v610_v15, %v610_v15 }
 0x18e   : > { %v717_v18 = vunpack.c.l.bf16 %v629_v16 }
 0x190   : > { %v733_v19 = vadd.f32 %v725_v17, %v717_v18 }
 0x192   : > { %v757_v21 = vmax.f32 %v733_v19, 0.0 }
 0x193   : > { %v613_v22 = vpop.f32.mrf.mxu1 }
 0x194   : > { %v764_v23 = vpack.c.bf16 %v757_v21, %v756_v20  ;;  %v630_v46 = vpack.c.bf16 %v613_v22, %v613_v22 }
 0x196   : > { %v718_v56 = vunpack.c.l.bf16 %v630_v46 }
 0x198   : > { %v734_v1 = vadd.f32 %v726_v60, %v718_v56 }
 0x19a   : > { %v758_v0 = vmax.f32 %v734_v1, 0.0 }
 0x19b   : > { %v615_v24 = vpop.f32.mrf.mxu1 }
 0x19c   : > { %v631_v40 = vpack.c.bf16 %v615_v24, %v615_v24 }
 0x19e   : > { %v719_v52 = vunpack.c.l.bf16 %v631_v40 }
 0x1a0   : > { %v735_v61 = vadd.f32 %v727_v55, %v719_v52 }
 0x1a2   : > { %v759_v4 = vmax.f32 %v735_v61, 0.0 }
 0x1a3   : > { %v618_v25 = vpop.f32.mrf.mxu1 }
 0x1a4   : > { %v632_v34 = vpack.c.bf16 %v618_v25, %v618_v25  ;;  %v765_v5 = vpack.c.bf16 %v759_v4, %v758_v0 }
 0x1a6   : > { %v720_v47 = vunpack.c.l.bf16 %v632_v34 }
 0x1a8   : > { %v736_v57 = vadd.f32 %v728_v50, %v720_v47 }
 0x1aa   : > { %v760_v2 = vmax.f32 %v736_v57, 0.0 }
 0x1ab   : > { %v620_v26 = vpop.f32.mrf.mxu1 }
 0x1ac   : > { %v633_v31 = vpack.c.bf16 %v620_v26, %v620_v26 }
 0x1ae   : > { %v721_v41 = vunpack.c.l.bf16 %v633_v31 }
 0x1b0   : > { %v737_v53 = vadd.f32 %v729_v45, %v721_v41 }
 0x1b2   : > { %v761_v63 = vmax.f32 %v737_v53, 0.0 }
 0x1b3   : > { %v623_v28 = vpop.f32.mrf.mxu1 }
 0x1b4   : > { %v634_v29 = vpack.c.bf16 %v623_v28, %v623_v28  ;;  %v766_v3 = vpack.c.bf16 %v761_v63, %v760_v2 }
 0x1b6   : > { %v722_v35 = vunpack.c.l.bf16 %v634_v29 }
 0x1b8   : > { %v738_v48 = vadd.f32 %v730_v38, %v722_v35 }
 0x1ba   : > { %v762_v59 = vmax.f32 %v738_v48, 0.0 }
 0x1bb   : > { %v625_v37 = vpop.f32.mrf.mxu1 }
 0x1bc   : > { %v635_v42 = vpack.c.bf16 %v625_v37, %v625_v37 }
 0x1be   : > { %v723_v49 = vunpack.c.l.bf16 %v635_v42 }
 0x1c0   : > { %v739_v54 = vadd.f32 %v731_v43, %v723_v49 }
 0x1c2   : > { %v763_v58 = vmax.f32 %v739_v54, 0.0 }
 0x1c4   : > { %v767_v62 = vpack.c.bf16 %v763_v58, %v762_v59 }
 0x1c6   : > { %782 = vmatpush.bf16.msrb.mxu2 %v767_v62 }
 0x1ca   : > { %783 = vmatpush.bf16.msrb.mxu2 %v766_v3 }
 0x1ce   : > { %784 = vmatpush.bf16.msrb.mxu2 %v765_v5 }
 0x1d2   : > { %785 = vmatpush.bf16.msrb.mxu2 %v764_v23 }
 0x1d5   : > { %893 = vmatmul.msk.bf16.vlgmr.msrb.gmra.mxu2 %vm586_vm1, %v768_v6 }
 0x258   : > { %v787_v8 = vpop.f32.mrf.mxu2 }
 0x259   : > { %v788_v9 = vadd.f32 %v787_v8, %v773_v7 }
 0x25b   : > { %791 = vst [vmem:[%s298_s21] sm:$0xff] %v788_v9 }
 0x260   : > { %v789_v10 = vpop.f32.mrf.mxu2 }
 0x261 PF: > { %s17_s24 = sadd.s32 1, %s939_s24  }
 0x262   : > { %p14_p5 = scmp.ge.s32.totalorder %s17_s24, 4  }
 0x264   :  { %16 = sbr.rel (!%p14_p5) target bundleno = 1 (0x1), region = 78 }

</bundles_post_ra>
